<compile_context>
chip_gen: v7x
topology: tpu7x:2x2x1
jax: 0.10.0
libtpu: 0.0.40
codegen_flags: <defaults>
</compile_context>

<pallas_src>
import functools

import jax
import jax.numpy as jnp
from jax.experimental import pallas as pl
from jax.experimental.pallas import tpu as pltpu


# ----------------------------- kernel -----------------------------
def _label_smoothing_kernel(target_ref, logits_ref, loss_ref, *,
                            confidence, eps, num_classes, n_valid, tile_n):
    # logits_ref: (C, TILE_N) f32  (classes on sublanes, samples on lanes)
    # target_ref: (1, TILE_N) i32
    # loss_ref:   (1, TILE_N) f32  per-sample loss (0 for padded samples)
    logits = logits_ref[...].astype(jnp.float32)
    tgt = target_ref[...]                                           # (1, TILE_N)

    # log-softmax over the class (sublane) axis
    m = jnp.max(logits, axis=0, keepdims=True)                      # (1, TILE_N)
    lse = m + jnp.log(jnp.sum(jnp.exp(logits - m), axis=0, keepdims=True))

    # logit of the target class via a one-hot select over rows (no MXU needed)
    row = jax.lax.broadcasted_iota(jnp.int32, logits.shape, 0)      # (C, TILE_N)
    onehot = (row == tgt).astype(jnp.float32)
    logit_t = jnp.sum(logits * onehot, axis=0, keepdims=True)       # (1, TILE_N)
    logp_t = logit_t - lse
    # sum_c logp[c] = (sum_c logits[c]) - C * lse
    sum_logp = jnp.sum(logits, axis=0, keepdims=True) - num_classes * lse

    loss = -((confidence - eps) * logp_t + eps * sum_logp)          # (1, TILE_N)

    # zero out padded samples (global sample index >= n_valid)
    idx = pl.program_id(0) * tile_n + jax.lax.broadcasted_iota(
        jnp.int32, loss.shape, 1)
    loss_ref[...] = jnp.where(idx < n_valid, loss, 0.0)


def _choose_tile_n(n, c):
    # Lane-dense tiles, as large as reasonable, but cap per-buffer bytes so
    # double-buffered logits tiles stay well under VMEM on all generations
    # (v7x has only 64 MiB physical / 32 MiB default scoped VMEM).
    cap_bytes = 4 * 1024 * 1024                         # per logits input buffer
    max_by_vmem = max(128, (cap_bytes // (c * 4)) // 128 * 128)
    tile = min(4096, max_by_vmem)
    n_pad128 = -(-n // 128) * 128
    return min(tile, n_pad128)


# ----------------------------- wrapper -----------------------------
def label_smoothing_loss(pred_nc, target_n, *, classes, smoothing=0.0):
    """Forward of LabelSmoothingLoss: pred (N, C) logits, target (N,) int labels."""
    assert classes >= 2, "smoothing/(classes-1) requires classes >= 2"
    n, c = pred_nc.shape
    assert c == classes
    confidence = 1.0 - smoothing
    eps = smoothing / (classes - 1)

    tile_n = _choose_tile_n(n, c)
    n_pad = -(-n // tile_n) * tile_n

    # channel-major, lane-dense layout: logits (C, N_pad), target (1, N_pad)
    logits_cn = jnp.transpose(pred_nc.astype(jnp.float32), (1, 0))
    target_1n = target_n.astype(jnp.int32).reshape(1, n)
    if n_pad != n:
        logits_cn = jnp.pad(logits_cn, ((0, 0), (0, n_pad - n)))
        target_1n = jnp.pad(target_1n, ((0, 0), (0, n_pad - n)))

    kernel = functools.partial(
        _label_smoothing_kernel,
        confidence=float(confidence),
        eps=float(eps),
        num_classes=float(classes),
        n_valid=n,
        tile_n=tile_n,
    )
    per_sample = pl.pallas_call(
        kernel,
        out_shape=jax.ShapeDtypeStruct((1, n_pad), jnp.float32),
        grid_spec=pltpu.PrefetchScalarGridSpec(
            num_scalar_prefetch=0,
            grid=(n_pad // tile_n,),
            in_specs=[
                pl.BlockSpec((1, tile_n), lambda i: (0, i)),   # target
                pl.BlockSpec((c, tile_n), lambda i: (0, i)),   # logits (channel-major)
            ],
            out_specs=pl.BlockSpec((1, tile_n), lambda i: (0, i)),
        ),
        compiler_params=pltpu.CompilerParams(
            dimension_semantics=("parallel",)),
    )(target_1n, logits_cn)

    # tiny final reduction (N floats) + mean in plain JAX
    return jnp.sum(per_sample) / jnp.float32(n)


if __name__ == "__main__":
    key = jax.random.PRNGKey(0)
    k1, k2 = jax.random.split(key)

    N, C = 512, 4
    smoothing = 0.1
    pred = jax.random.normal(k1, (N, C), dtype=jnp.float32)
    target = jax.random.randint(k2, (N,), 0, C, dtype=jnp.int32)

    loss = label_smoothing_loss(pred, target, classes=C, smoothing=smoothing)
    loss = jax.block_until_ready(loss)

    # pure-JAX reference of the PyTorch module for a sanity check
    logp = jax.nn.log_softmax(pred, axis=-1)
    conf = 1.0 - smoothing
    eps = smoothing / (C - 1)
    true_dist = jnp.full((N, C), eps, dtype=jnp.float32)
    true_dist = true_dist.at[jnp.arange(N), target].set(conf)
    ref = jnp.mean(jnp.sum(-true_dist * logp, axis=-1))

    assert jnp.isfinite(loss), f"loss not finite: {loss}"
    assert jnp.allclose(loss, ref, rtol=1e-5, atol=1e-5), (loss, ref)
    print("KERNEL_OK")
</pallas_src>

<mosaic_0001>
module attributes {stable_mosaic.version = 11 : i64} {
  func.func @_label_smoothing_kernel(%arg0: i32, %arg1: memref<1x512xi32, #tpu.memory_space<vmem>>, %arg2: memref<4x512xf32, #tpu.memory_space<vmem>>, %arg3: memref<1x512xf32, #tpu.memory_space<vmem>>) attributes {dimension_semantics = [#tpu.dimension_semantics<parallel>], iteration_bounds = array<i64: 1>, scalar_prefetch = 0 : i64, scratch_operands = 0 : i64, tpu.core_type = #tpu.core_type<tc>, window_params = [{transform_indices = @transform_0, window_bounds = array<i64: 1, 512>}, {transform_indices = @transform_1, window_bounds = array<i64: 4, 512>}, {transform_indices = @transform_2, window_bounds = array<i64: 1, 512>}]} {
    %c0 = arith.constant 0 : index
    %c0_0 = arith.constant 0 : index
    %0 = vector.load %arg2[%c0, %c0_0] : memref<4x512xf32, #tpu.memory_space<vmem>>, vector<4x512xf32>
    %c0_1 = arith.constant 0 : index
    %c0_2 = arith.constant 0 : index
    %1 = vector.load %arg1[%c0_1, %c0_2] : memref<1x512xi32, #tpu.memory_space<vmem>>, vector<1x512xi32>
    %cst = arith.constant dense<0xFF800000> : vector<512xf32>
    %2 = vector.multi_reduction <maximumf>, %0, %cst [0] : vector<4x512xf32> to vector<512xf32>
    %3 = vector.shape_cast %2 : vector<512xf32> to vector<1x512xf32>
    %4 = vector.broadcast %3 : vector<1x512xf32> to vector<4x512xf32>
    %5 = arith.subf %0, %4 : vector<4x512xf32>
    %6 = math.exp %5 : vector<4x512xf32>
    %cst_3 = arith.constant dense<0.000000e+00> : vector<512xf32>
    %7 = vector.multi_reduction <add>, %6, %cst_3 [0] : vector<4x512xf32> to vector<512xf32>
    %8 = vector.shape_cast %7 : vector<512xf32> to vector<1x512xf32>
    %9 = math.log %8 : vector<1x512xf32>
    %10 = arith.addf %3, %9 : vector<1x512xf32>
    %11 = tpu.iota {dimensions = array<i32: 0>} : vector<4x512xi32>
    %12 = vector.broadcast %1 : vector<1x512xi32> to vector<4x512xi32>
    %13 = arith.cmpi eq, %11, %12 : vector<4x512xi32>
    %14 = arith.extui %13 : vector<4x512xi1> to vector<4x512xi32>
    %15 = arith.sitofp %14 : vector<4x512xi32> to vector<4x512xf32>
    %16 = arith.mulf %0, %15 : vector<4x512xf32>
    %cst_4 = arith.constant dense<0.000000e+00> : vector<512xf32>
    %17 = vector.multi_reduction <add>, %16, %cst_4 [0] : vector<4x512xf32> to vector<512xf32>
    %18 = vector.shape_cast %17 : vector<512xf32> to vector<1x512xf32>
    %19 = arith.subf %18, %10 : vector<1x512xf32>
    %cst_5 = arith.constant dense<0.000000e+00> : vector<512xf32>
    %20 = vector.multi_reduction <add>, %0, %cst_5 [0] : vector<4x512xf32> to vector<512xf32>
    %21 = vector.shape_cast %20 : vector<512xf32> to vector<1x512xf32>
    %cst_6 = arith.constant 4.000000e+00 : f32
    %22 = vector.broadcast %cst_6 : f32 to vector<1x512xf32>
    %23 = arith.mulf %22, %10 : vector<1x512xf32>
    %24 = arith.subf %21, %23 : vector<1x512xf32>
    %cst_7 = arith.constant 0.866666674 : f32
    %25 = vector.broadcast %cst_7 : f32 to vector<1x512xf32>
    %26 = arith.mulf %25, %19 : vector<1x512xf32>
    %cst_8 = arith.constant 0.0333333351 : f32
    %27 = vector.broadcast %cst_8 : f32 to vector<1x512xf32>
    %28 = arith.mulf %27, %24 : vector<1x512xf32>
    %29 = arith.addf %26, %28 : vector<1x512xf32>
    %cst_9 = arith.constant 0.000000e+00 : f32
    %30 = vector.broadcast %cst_9 : f32 to vector<1x512xf32>
    %31 = arith.subf %30, %29 : vector<1x512xf32>
    %c512_i32 = arith.constant 512 : i32
    %32 = arith.muli %arg0, %c512_i32 : i32
    %33 = tpu.iota {dimensions = array<i32: 1>} : vector<1x512xi32>
    %34 = vector.broadcast %32 : i32 to vector<1x512xi32>
    %35 = arith.addi %34, %33 : vector<1x512xi32>
    %c512_i32_10 = arith.constant 512 : i32
    %36 = vector.broadcast %c512_i32_10 : i32 to vector<1x512xi32>
    %37 = arith.cmpi slt, %35, %36 : vector<1x512xi32>
    %cst_11 = arith.constant 0.000000e+00 : f32
    %38 = vector.broadcast %cst_11 : f32 to vector<1x512xf32>
    %39 = arith.select %37, %31, %38 : vector<1x512xi1>, vector<1x512xf32>
    %c0_12 = arith.constant 0 : index
    %c0_13 = arith.constant 0 : index
    %40 = vector.load %arg3[%c0_12, %c0_13] : memref<1x512xf32, #tpu.memory_space<vmem>>, vector<1x512xf32>
    tpu.vector_store %arg3[%c0_12, %c0_13], %39 {strides = array<i32>} : memref<1x512xf32, #tpu.memory_space<vmem>>, vector<1x512xf32>,
    return
  }
  func.func @transform_0(%arg0: i32) -> (i32, i32) {
    %c0_i32 = arith.constant 0 : i32
    %c0_i32_0 = arith.constant 0 : i32
    return %c0_i32, %arg0 : i32, i32
  }
  func.func @transform_1(%arg0: i32) -> (i32, i32) {
    %c0_i32 = arith.constant 0 : i32
    %c0_i32_0 = arith.constant 0 : i32
    return %c0_i32, %arg0 : i32, i32
  }
  func.func @transform_2(%arg0: i32) -> (i32, i32) {
    %c0_i32 = arith.constant 0 : i32
    %c0_i32_0 = arith.constant 0 : i32
    return %c0_i32, %arg0 : i32, i32
  }
}

</mosaic_0001>

<bundles_post_ra>
// kernel: tpu_custom_call.1
= control target key start
LH: loop header
LB: loop body
LE: loop exit
PB: predicated region body
PF: predicated region fallthrough
CT: control target
= control target key end

     0   :  { %7 = vsyncpa [#allocation3], 0  ;;  %s553_s0 = inlined_call_operand.hbm [shape: s32[1,512], index: 0, kind: input, shape index: {}]   ;;  %s554_s1 = inlined_call_operand.hbm [shape: f32[4,512], index: 1, kind: input, shape index: {}]   ;;  %s555_s2 = inlined_call_operand.hbm [shape: f32[1,512], index: 2, kind: output, shape index: {}]  }
   0x1   :  { %8 = vsyncpa [#allocation6], 0 }
   0x2   :  { %9 = vsyncpa [#allocation4], 0  ;;  %s428_s9 = smov [#allocation2]   ;;  %s429_s11 = smov [#allocation5]  }
   0x3   :  { %s16_s10 = sshll.u32 %s428_s9, 4  ;;  %s26_s12 = sshll.u32 %s429_s11, 4  ;;  %s17_s10 = int_to_ptr.vmem [resolvable:$true] %s16_s10  ;;  %s27_s12 = int_to_ptr.vmem [resolvable:$true] %s26_s12 }
   0x4   :  { %s356_s15 = scalar_lea.hbm %s553_s0, 64 }
   0x5   :  { %p357_p0 = scmp.ne.s32.totalorder %s553_s0, %s356_s15  ;;  %p360_p1 = scmp.lt.u32.totalorder %s356_s15, %s553_s0 }
   0x7   :  { %p362_p2 = pnand %p360_p1, %p357_p0 }
   0x9   :  { %365 = shalt.err (!%p362_p2)
}
   0xa   :  { %s366_s20 = scalar_lea.vmem %s17_s10, 64  ;;  %p371_p4 = scmp.lt.s32.totalorder %s17_s10, %s17_s10 }
   0xb   :  { %p367_p3 = scmp.ne.s32.totalorder %s17_s10, %s366_s20  ;;  %p372_p5 = scmp.lt.s32.totalorder %s366_s20, %s366_s20 }
   0xd   :  { %p373_p6 = por %p372_p5, %p371_p4 }
   0xf   :  { %p374_p7 = pnand %p373_p6, %p367_p3 }
  0x11   :  { %377 = shalt.err (!%p374_p7)
}
  0x12   :  { %19 = dma.hbm_to_vmem [thread:$0]  %s553_s0, 64, %s17_s10, [#allocation3]  }
  0x13   :  { %s378_s25 = scalar_lea.hbm %s554_s1, 256 }
  0x14   :  { %p379_p8 = scmp.ne.s32.totalorder %s554_s1, %s378_s25  ;;  %p382_p9 = scmp.lt.u32.totalorder %s378_s25, %s554_s1 }
  0x16   :  { %p384_p10 = pnand %p382_p9, %p379_p8 }
  0x18   :  { %387 = shalt.err (!%p384_p10)
}
  0x19   :  { %s388_s30 = scalar_lea.vmem %s27_s12, 256  ;;  %p393_p12 = scmp.lt.s32.totalorder %s27_s12, %s27_s12 }
  0x1a   :  { %p389_p11 = scmp.ne.s32.totalorder %s27_s12, %s388_s30  ;;  %p394_p13 = scmp.lt.s32.totalorder %s388_s30, %s388_s30 }
  0x1c   :  { %p395_p0 = por %p394_p13, %p393_p12 }
  0x1e   :  { %p396_p1 = pnand %p395_p0, %p389_p11 }
  0x20   :  { %399 = shalt.err (!%p396_p1)
}
  0x21   :  { %29 = dma.hbm_to_vmem [thread:$0]  %s554_s1, 256, %s27_s12, [#allocation6]  }
  0x22   :  { %422 = dma.done.wait [#allocation3], 64  }
  0x23   :  { %423 = vsyncadd [#allocation3], 4294967232 }
  0x24   :  { %424 = dma.done.wait [#allocation6], 256  }
  0x25   :  { %425 = vsyncadd [#allocation6], 4294967040  ;;  %vm45_vm0 = vcmask 1043456   ;;  %v472_v0 = vld [vmem:[#allocation5] sm:$0xff]  ;;  %v474_v1 = vld [vmem:[#allocation5 + $0x8] sm:$0xff]  ;;  %v134_v2 = vlaneseq  ;;  %v430_v49 = vmov 0.0  }
  0x26   :  { %v478_v3 = vcombine.high %v472_v0, %v472_v0  ;;  %v482_v4 = vcombine.high %v474_v1, %v474_v1  ;;  %v46_v5 = vsel %vm45_vm0, %v472_v0, -inf  ;;  %v60_v6 = vsel %vm45_vm0, %v474_v1, -inf  ;;  %v38_v30 = vld [vmem:[#allocation2] sm:$0xf]  ;;  %s432_s1 = smov [#allocation7]  }
  0x27   :  { %v47_v7 = vrot.slane %v46_v5, 4  ;;  %v61_v8 = vrot.slane %v60_v6, 4  ;;  %v493_v15 = vshrl.u32 %v134_v2, 7  ;;  %s323_s4 = sshll.u32 %s432_s1, 4  ;;  %vm314_vm5 = vcmp.lt.s32.totalorder %v134_v2, 512  ;;  %s324_s4 = int_to_ptr.vmem [resolvable:$true] %s323_s4 }
  0x28   :  { %v53_v9 = vsel %vm45_vm0, %v478_v3, -inf  ;;  %v67_v10 = vsel %vm45_vm0, %v482_v4, -inf  ;;  %s400_s5 = scalar_lea.vmem %s324_s4, 64  ;;  %p405_p3 = scmp.lt.s32.totalorder %s324_s4, %s324_s4 }
  0x29   :  { %v48_v11 = vmax.f32 %v46_v5, %v47_v7  ;;  %v54_v12 = vrot.slane %v53_v9, 4  ;;  %v62_v13 = vmax.f32 %v60_v6, %v61_v8  ;;  %v68_v14 = vrot.slane %v67_v10, 4  ;;  %p401_p2 = scmp.ne.s32.totalorder %s324_s4, %s400_s5  ;;  %p406_p4 = scmp.lt.s32.totalorder %s400_s5, %s400_s5 }
  0x2a   :  { %v138_v24 = vsub.s32 0, %v493_v15  ;;  %v142_v25 = vsub.s32 1, %v493_v15  ;;  %v146_v31 = vsub.s32 2, %v493_v15  ;;  %v150_v32 = vsub.s32 3, %v493_v15 }
  0x2b   :  { %v49_v16 = vrot.slane %v48_v11, 2  ;;  %v55_v17 = vmax.f32 %v53_v9, %v54_v12  ;;  %v63_v18 = vrot.slane %v62_v13, 2  ;;  %v69_v19 = vmax.f32 %v67_v10, %v68_v14  ;;  %p407_p5 = por %p406_p4, %p405_p3 }
  0x2c   :  { %v139_v39 = vrot.slane %v38_v30, %v138_v24  ;;  %v143_v40 = vrot.slane %v38_v30, %v142_v25  ;;  %v147_v41 = vrot.slane %v38_v30, %v146_v31  ;;  %v151_v42 = vrot.slane %v38_v30, %v150_v32 }
  0x2d   :  { %v50_v20 = vmax.f32 %v48_v11, %v49_v16  ;;  %v56_v21 = vrot.slane %v55_v17, 2  ;;  %v64_v22 = vmax.f32 %v62_v13, %v63_v18  ;;  %v70_v23 = vrot.slane %v69_v19, 2  ;;  %p408_p6 = pnand %p407_p5, %p401_p2 }
  0x2e   :  { %vm152_vm1 = vcmp.eq.s32.totalorder %v493_v15, %v139_v39  ;;  %vm153_vm2 = vcmp.eq.s32.totalorder %v493_v15, %v143_v40  ;;  %vm154_vm3 = vcmp.eq.s32.totalorder %v493_v15, %v147_v41  ;;  %vm155_vm4 = vcmp.eq.s32.totalorder %v493_v15, %v151_v42 }
  0x2f   :  { %v51_v26 = vrot.slane %v50_v20, 1  ;;  %v57_v27 = vmax.f32 %v55_v17, %v56_v21  ;;  %v65_v28 = vrot.slane %v64_v22, 1  ;;  %v71_v29 = vmax.f32 %v69_v19, %v70_v23 }
  0x30   :  { %v333_v50 = vsel %vm152_vm1, 1.0, %v430_v49  ;;  %v334_v51 = vsel %vm153_vm2, 1.0, %v430_v49  ;;  %v335_v52 = vsel %vm154_vm3, 1.0, %v430_v49  ;;  %v336_v53 = vsel %vm155_vm4, 1.0, %v430_v49 }
  0x31   :  { %v499_v33 = vmax.f32 %v50_v20, %v51_v26  ;;  %v58_v34 = vrot.slane %v57_v27, 1  ;;  %v501_v35 = vmax.f32 %v64_v22, %v65_v28  ;;  %v72_v36 = vrot.slane %v71_v29, 1 }
  0x32   :  { %v168_v54 = vcombine.low %v333_v50, %v334_v51  ;;  %v169_v55 = vcombine.low %v335_v52, %v336_v53  ;;  %v212_v6 = vsel %vm45_vm0, %v472_v0, 0.0  ;;  %v219_v10 = vsel %vm45_vm0, %v478_v3, 0.0 }
  0x33   :  { %v503_v37 = vmax.f32 %v57_v27, %v58_v34  ;;  %v505_v38 = vmax.f32 %v71_v29, %v72_v36  ;;  %v226_v22 = vsel %vm45_vm0, %v474_v1, 0.0  ;;  %v213_v25 = vrot.slane %v212_v6, 4 }
  0x34   :  { %v172_v56 = vmul.f32 %v168_v54, %v472_v0  ;;  %v173_v57 = vmul.f32 %v169_v55, %v474_v1  ;;  %v233_v29 = vsel %vm45_vm0, %v482_v4, 0.0  ;;  %v227_v34 = vrot.slane %v226_v22, 4 }
  0x35   :  { %v78_v43 = vcombine.low %v499_v33, %v503_v37  ;;  %v79_v44 = vcombine.low %v501_v35, %v505_v38  ;;  %v220_v41 = vrot.slane %v219_v10, 4 }
  0x36   :  { %v176_v59 = vcombine.high %v172_v56, %v172_v56  ;;  %v180_v60 = vsel %vm45_vm0, %v172_v56, 0.0  ;;  %v177_v5 = vcombine.high %v173_v57, %v173_v57  ;;  %v194_v14 = vsel %vm45_vm0, %v173_v57, 0.0 }
  0x37   :  { %v82_v45 = vsub.f32 %v472_v0, %v78_v43  ;;  %v83_v46 = vsub.f32 %v474_v1, %v79_v44  ;;  %v181_v13 = vrot.slane %v180_v60, 4  ;;  %v195_v24 = vrot.slane %v194_v14, 4 }
  0x38   :  { %v187_v19 = vsel %vm45_vm0, %v176_v59, 0.0  ;;  %v201_v21 = vsel %vm45_vm0, %v177_v5, 0.0  ;;  %v234_v44 = vrot.slane %v233_v29, 4  ;;  %v228_v4 = vadd.f32 %v227_v34, %v226_v22 }
  0x39   :  { %v84_v47 = vmul.f32 1.442695, %v82_v45  ;;  %v86_v48 = vmul.f32 1.442695, %v83_v46  ;;  %v188_v28 = vrot.slane %v187_v19, 4  ;;  %v202_v32 = vrot.slane %v201_v21, 4 }
  0x3a   :  { %v182_v40 = vadd.f32 %v181_v13, %v180_v60  ;;  %v196_v43 = vadd.f32 %v195_v24, %v194_v14  ;;  %v221_v55 = vadd.f32 %v220_v41, %v219_v10 }
  0x3b   :  { %344 = vpow2.f32 %v84_v47  ;;  %v189_v47 = vadd.f32 %v188_v28, %v187_v19  ;;  %v203_v51 = vadd.f32 %v202_v32, %v201_v21 }
  0x3c   :  { %346 = vpow2.f32 %v86_v48  ;;  %v214_v48 = vadd.f32 %v213_v25, %v212_v6  ;;  %v183_v54 = vrot.slane %v182_v40, 2  ;;  %v197_v57 = vrot.slane %v196_v43, 2 }
  0x3d   :  { %v190_v60 = vrot.slane %v189_v47, 2  ;;  %v222_v6 = vrot.slane %v221_v55, 2 }
  0x3e   :  { %v184_v5 = vadd.f32 %v183_v54, %v182_v40 }
  0x3f   :  { %v223_v14 = vadd.f32 %v222_v6, %v221_v55 }
  0x40   :  { %v185_v13 = vrot.slane %v184_v5, 1 }
  0x41   :  { %v224_v24 = vrot.slane %v223_v14, 1 }
  0x45   :  { %v345_v58 = vpop.eup %344 }
  0x46   :  { %v347_v61 = vpop.eup %346  ;;  %v90_v62 = vcombine.high %v345_v58, %v345_v58  ;;  %v94_v63 = vsel %vm45_vm0, %v345_v58, 0.0  ;;  %v235_v58 = vadd.f32 %v234_v44, %v233_v29  ;;  %v431_v29 = vmov 1966171168  }
  0x47   :  { %v91_v7 = vcombine.high %v347_v61, %v347_v61  ;;  %v95_v8 = vrot.slane %v94_v63, 4  ;;  %v108_v9 = vsel %vm45_vm0, %v347_v61, 0.0  ;;  %v215_v61 = vrot.slane %v214_v48, 2 }
  0x48   :  { %v101_v11 = vsel %vm45_vm0, %v90_v62, 0.0  ;;  %v109_v12 = vrot.slane %v108_v9, 4  ;;  %v204_v62 = vrot.slane %v203_v51, 2 }
  0x49   :  { %v96_v16 = vadd.f32 %v95_v8, %v94_v63  ;;  %v102_v17 = vrot.slane %v101_v11, 4  ;;  %v115_v18 = vsel %vm45_vm0, %v91_v7, 0.0  ;;  %v229_v63 = vrot.slane %v228_v4, 2 }
  0x4a   :  { %v110_v0 = vadd.f32 %v109_v12, %v108_v9  ;;  %v116_v20 = vrot.slane %v115_v18, 4  ;;  %v198_v7 = vadd.f32 %v197_v57, %v196_v43  ;;  %v236_v8 = vrot.slane %v235_v58, 2 }
  0x4b   :  { %v97_v3 = vrot.slane %v96_v16, 2  ;;  %v103_v23 = vadd.f32 %v102_v17, %v101_v11  ;;  %v191_v9 = vadd.f32 %v190_v60, %v189_v47  ;;  %v216_v11 = vadd.f32 %v215_v61, %v214_v48 }
  0x4c   :  { %v111_v26 = vrot.slane %v110_v0, 2  ;;  %v117_v27 = vadd.f32 %v116_v20, %v115_v18  ;;  %v205_v12 = vadd.f32 %v204_v62, %v203_v51  ;;  %v230_v10 = vadd.f32 %v229_v63, %v228_v4 }
  0x4d   :  { %v98_v30 = vadd.f32 %v97_v3, %v96_v16  ;;  %v104_v31 = vrot.slane %v103_v23, 2  ;;  %v199_v16 = vrot.slane %v198_v7, 1  ;;  %v237_v17 = vadd.f32 %v236_v8, %v235_v58 }
  0x4e   :  { %v112_v36 = vadd.f32 %v111_v26, %v110_v0  ;;  %v118_v39 = vrot.slane %v117_v27, 2  ;;  %v192_v18 = vrot.slane %v191_v9, 1  ;;  %v217_v19 = vrot.slane %v216_v11, 1 }
  0x4f   :  { %v99_v42 = vrot.slane %v98_v30, 1  ;;  %v105_v1 = vadd.f32 %v104_v31, %v103_v23  ;;  %v206_v20 = vrot.slane %v205_v12, 1  ;;  %v231_v21 = vrot.slane %v230_v10, 1 }
  0x50   :  { %v113_v45 = vrot.slane %v112_v36, 1  ;;  %v119_v46 = vadd.f32 %v118_v39, %v117_v27  ;;  %v186_v23 = vadd.f32 %v185_v13, %v184_v5  ;;  %v200_v27 = vadd.f32 %v199_v16, %v198_v7 }
  0x51   :  { %v100_v49 = vadd.f32 %v99_v42, %v98_v30  ;;  %v106_v50 = vrot.slane %v105_v1, 1  ;;  %v238_v28 = vrot.slane %v237_v17, 1  ;;  %v290_v30 = vunpack.c.l.s4 %v431_v29 }
  0x52   :  { %v114_v52 = vadd.f32 %v113_v45, %v112_v36  ;;  %v120_v53 = vrot.slane %v119_v46, 1  ;;  %v193_v36 = vadd.f32 %v192_v18, %v191_v9  ;;  %v218_v39 = vadd.f32 %v217_v19, %v216_v11 }
  0x53   :  { %v107_v56 = vadd.f32 %v106_v50, %v105_v1  ;;  %348 = vlog2.f32 %v100_v49  ;;  %v207_v42 = vadd.f32 %v206_v20, %v205_v12  ;;  %v232_v1 = vadd.f32 %v231_v21, %v230_v10 }
  0x54   :  { %v121_v59 = vadd.f32 %v120_v53, %v119_v46  ;;  %350 = vlog2.f32 %v114_v52  ;;  %v225_v45 = vadd.f32 %v224_v24, %v223_v14  ;;  %v239_v49 = vadd.f32 %v238_v28, %v237_v17 }
  0x55   :  { %352 = vlog2.f32 %v107_v56 }
  0x56   :  { %354 = vlog2.f32 %v121_v59 }
  0x5d   :  { %v349_v0 = vpop.eup %348 }
  0x5e   :  { %v351_v22 = vpop.eup %350  ;;  %v123_v3 = vmul.f32 0.6931472, %v349_v0 }
  0x5f   :  { %v353_v25 = vpop.eup %352  ;;  %v127_v26 = vmul.f32 0.6931472, %v351_v22 }
  0x60   :  { %v355_v31 = vpop.eup %354  ;;  %v125_v32 = vmul.f32 0.6931472, %v353_v25  ;;  %v130_v34 = vadd.f32 %v123_v3, %v499_v33 }
  0x61   :  { %v129_v40 = vmul.f32 0.6931472, %v355_v31  ;;  %v132_v41 = vadd.f32 %v127_v26, %v501_v35 }
  0x62   :  { %v131_v43 = vadd.f32 %v125_v32, %v503_v37  ;;  %v208_v44 = vsub.f32 %v186_v23, %v130_v34  ;;  %v240_v46 = vmul.f32 4.0, %v130_v34 }
  0x63   :  { %v133_v47 = vadd.f32 %v129_v40, %v505_v38  ;;  %v210_v48 = vsub.f32 %v200_v27, %v132_v41  ;;  %v242_v50 = vmul.f32 4.0, %v132_v41  ;;  %v291_v38 = vunpack.c.0.s8 %v290_v30 }
  0x64   :  { %v209_v51 = vsub.f32 %v193_v36, %v131_v43  ;;  %v241_v4 = vmul.f32 4.0, %v131_v43  ;;  %v244_v33 = vsub.f32 %v218_v39, %v240_v46  ;;  %v248_v52 = vmul.f32 0.8666667, %v208_v44 }
  0x65   :  { %v211_v53 = vsub.f32 %v207_v42, %v133_v47  ;;  %v243_v54 = vmul.f32 4.0, %v133_v47  ;;  %v246_v55 = vsub.f32 %v232_v1, %v242_v50  ;;  %v250_v35 = vmul.f32 0.8666667, %v210_v48 }
  0x66   :  { %v245_v56 = vsub.f32 %v225_v45, %v241_v4  ;;  %v249_v57 = vmul.f32 0.8666667, %v209_v51  ;;  %v252_v58 = vmul.f32 0.033333335, %v244_v33  ;;  %v294_v12 = vsub.s32 %v291_v38, %v493_v15 }
  0x67   :  { %v247_v37 = vsub.f32 %v239_v49, %v243_v54  ;;  %v251_v59 = vmul.f32 0.8666667, %v211_v53  ;;  %v254_v60 = vmul.f32 0.033333335, %v246_v55 }
  0x68   :  { %v253_v61 = vmul.f32 0.033333335, %v245_v56  ;;  %v256_v62 = vadd.f32 %v252_v58, %v248_v52 }
  0x69   :  { %v255_v63 = vmul.f32 0.033333335, %v247_v37  ;;  %v258_v5 = vadd.f32 %v254_v60, %v250_v35 }
  0x6a   :  { %v257_v6 = vadd.f32 %v253_v61, %v249_v57  ;;  %v260_v7 = vsub.f32 0.0, %v256_v62 }
  0x6b   :  { %v259_v8 = vadd.f32 %v255_v63, %v251_v59  ;;  %v262_v9 = vsub.f32 0.0, %v258_v5 }
  0x6c   :  { %v261_v11 = vsub.f32 0.0, %v257_v6 }
  0x6d   :  { %v263_v10 = vsub.f32 0.0, %v259_v8 }
  0x6e   :  { %v287_v13 = vcombine.low %v260_v7, %v261_v11 }
  0x6f   :  { %v288_v14 = vcombine.low %v262_v9, %v263_v10 }
  0x70   :  { %v295_v16 = vrot.slane %v287_v13, %v294_v12 }
  0x71   :  { %v302_v17 = vrot.slane %v288_v14, %v294_v12 }
  0x73   :  { %v303_v18 = vcombine.low %v295_v16, %v302_v17 }
  0x75   :  { %v310_v19 = vrot.slane %v303_v18, %v294_v12 }
  0x77   :  { %316 = vst.msk [vmem:[#allocation7] sm:$0xf] %vm314_vm5, %v310_v19 }
  0x78   :  { %411 = shalt.err (!%p408_p6)
}
  0x79   :  { %s412_s8 = scalar_lea.hbm %s555_s2, 64 }
  0x7a   :  { %p413_p7 = scmp.ne.s32.totalorder %s555_s2, %s412_s8  ;;  %p416_p8 = scmp.lt.u32.totalorder %s412_s8, %s555_s2 }
  0x7c   :  { %p418_p9 = pnand %p416_p8, %p413_p7 }
  0x7e   :  { %421 = shalt.err (!%p418_p9)
}
  0x7f   :  { %326 = dma.vmem_to_hbm [thread:$0]  %s324_s4, 64, %s555_s2, [#allocation4]  }
  0x80   :  { %426 = dma.done.wait [#allocation4], 64  }
  0x81   :  { %427 = vsyncadd [#allocation4], 4294967232 }
  0x82   :  { %330 = vsyncpa [#allocation3], 1 }
  0x83   :  { %331 = vsyncpa [#allocation6], 1 }
  0x84   :  { %332 = vsyncpa [#allocation4], 1 }

</bundles_post_ra>
